<compile_context>
chip_gen: v7x
topology: tpu7x:2x2x1
jax: 0.10.0
libtpu: 0.0.40
codegen_flags: <defaults>
</compile_context>

<pallas_src>
import functools

import jax
import jax.numpy as jnp
from jax.experimental import pallas as pl
from jax.experimental.pallas import tpu as pltpu

LANE = 128
SUBLANE = 8


def _pad_axis(x, axis, new_size):
    pad = new_size - x.shape[axis]
    if pad == 0:
        return x
    widths = [(0, 0)] * x.ndim
    widths[axis] = (0, pad)
    return jnp.pad(x, widths)


# ----------------------------------------------------------------------------
# Fused Pallas kernel: local_model (RMSNorm + SwiGLU + residual) followed by
# the adversarial MLP head, all while the hidden state is still in VMEM.
# ----------------------------------------------------------------------------
def _fused_kernel(x_ref, gamma_ref, wgu_ref, wd_ref, w1_ref, b1_ref, w2_ref, b2_ref,
                  origin_ref, adv_ref, *, ffn, hidden_true):
    """
    x_ref:      [TM, Hp]     token-embedding tile, zero-padded cols (f32)
    gamma_ref:  [1, Hp]      RMSNorm scale, zero-padded (f32)
    wgu_ref:    [Hp, 2F]     concat(gate, up) projection (bf16, zero-padded rows)
    wd_ref:     [F, Hp]      down projection (bf16, zero-padded cols)
    w1_ref:     [Hp, A]      adversarial hidden projection (bf16, zero-padded rows)
    b1_ref:     [1, A]       bias (f32)
    w2_ref:     [A, Cp]      adversarial output projection, lane-padded (bf16)
    b2_ref:     [1, Cp]      bias, lane-padded (f32)
    origin_ref: [TM, Hp]     origin_output, lane-padded (f32)
    adv_ref:    [TM, Cp]     adversarial logits, lane-padded (f32)
    """
    x = x_ref[...].astype(jnp.float32)

    # RMSNorm (LlamaRMSNorm, eps = 1e-6).  Use sum / true-H (not mean over the
    # padded width) so zero-padded columns are numerically exact.
    var = jnp.sum(x * x, axis=-1, keepdims=True) * (1.0 / hidden_true)
    xn = (x * jax.lax.rsqrt(var + 1e-6)) * gamma_ref[...]
    xn_bf = xn.astype(jnp.bfloat16)

    # Fused gate+up projection: one wide MXU push instead of two narrow ones.
    gu = jnp.dot(xn_bf, wgu_ref[...], preferred_element_type=jnp.float32)   # [TM, 2F]
    g = gu[:, :ffn]
    u = gu[:, ffn:]
    h = (g * jax.nn.sigmoid(g)) * u                                         # SiLU(g) * u, f32

    y = jnp.dot(h.astype(jnp.bfloat16), wd_ref[...],
                preferred_element_type=jnp.float32)                         # [TM, Hp]
    origin = x + y                                                          # pre-norm residual
    origin_ref[...] = origin.astype(origin_ref.dtype)                       # unmasked vst

    # Adversarial head: ReLU(origin @ W1 + b1) @ W2 + b2 (output lane-padded).
    a = jnp.dot(origin.astype(jnp.bfloat16), w1_ref[...],
                preferred_element_type=jnp.float32) + b1_ref[...]
    a = jnp.maximum(a, 0.0)
    logits = jnp.dot(a.astype(jnp.bfloat16), w2_ref[...],
                     preferred_element_type=jnp.float32) + b2_ref[...]
    adv_ref[...] = logits.astype(adv_ref.dtype)                             # unmasked vst


# ----------------------------------------------------------------------------
# Python wrapper: one fused pallas_call over a T-tiled grid.
# ----------------------------------------------------------------------------
def fused_forward_pallas(emb_2d, params, *, tm=256):
    """emb_2d: [T, H] -> (origin_output [T, H] f32, adversarial logits [T, C] f32)."""
    T, H = emb_2d.shape
    F = params["w_gate"].shape[1]
    A = params["w1"].shape[1]
    C = params["w2"].shape[1]

    # Lane-dense output widths (pad only when needed; real Llama H is already
    # a multiple of 128 so this is a no-op there).
    H_pad = max(LANE, pl.cdiv(H, LANE) * LANE)
    C_pad = max(LANE, pl.cdiv(C, LANE) * LANE)

    # Token-tile size: cap at `tm`, keep sublane-aligned, pad T up to a multiple.
    tm = min(tm, max(SUBLANE, pl.cdiv(T, SUBLANE) * SUBLANE))
    T_pad = pl.cdiv(T, tm) * tm
    x = emb_2d
    if T_pad != T:
        x = jnp.pad(x, ((0, T_pad - T), (0, 0)))
    if H_pad != H:
        x = _pad_axis(x, 1, H_pad)

    # bf16 matmul operands (MXU-native); biases / gamma stay f32.
    gamma = _pad_axis(params["rms_gamma"].astype(jnp.float32), 1, H_pad)
    wgu = jnp.concatenate([params["w_gate"], params["w_up"]], axis=1).astype(jnp.bfloat16)
    wgu = _pad_axis(wgu, 0, H_pad)                                    # [Hp, 2F]
    wd = _pad_axis(params["w_down"].astype(jnp.bfloat16), 1, H_pad)   # [F, Hp]
    w1 = _pad_axis(params["w1"].astype(jnp.bfloat16), 0, H_pad)       # [Hp, A]
    b1 = params["b1"].astype(jnp.float32)
    w2 = _pad_axis(params["w2"].astype(jnp.bfloat16), 1, C_pad)       # [A, Cp]
    b2 = _pad_axis(params["b2"].astype(jnp.float32), 1, C_pad)        # [1, Cp]

    kernel = functools.partial(_fused_kernel, ffn=F, hidden_true=float(H))

    def const_spec(shape):
        # Weight tiles: same block for every grid step -> stay resident in VMEM.
        return pl.BlockSpec(shape, lambda i: (0, 0))

    # TODO(synk): for real Llama dims (H=4096, F~11k) add a K/F-reduction grid
    # axis with an f32 accumulator (pl.when init/finalize) and re-derive tile
    # budgets for v7x's 64 MiB VMEM (set vmem_limit_bytes explicitly).
    origin_pad, adv_pad = pl.pallas_call(
        kernel,
        out_shape=(
            jax.ShapeDtypeStruct((T_pad, H_pad), jnp.float32),
            jax.ShapeDtypeStruct((T_pad, C_pad), jnp.float32),
        ),
        grid=(T_pad // tm,),
        in_specs=[
            pl.BlockSpec((tm, H_pad), lambda i: (i, 0)),   # embeddings tile
            const_spec((1, H_pad)),                        # rms gamma
            const_spec((H_pad, 2 * F)),                    # gate|up
            const_spec((F, H_pad)),                        # down
            const_spec((H_pad, A)),                        # adv W1
            const_spec((1, A)),                            # adv b1
            const_spec((A, C_pad)),                        # adv W2 (padded)
            const_spec((1, C_pad)),                        # adv b2 (padded)
        ],
        out_specs=(
            pl.BlockSpec((tm, H_pad), lambda i: (i, 0)),
            pl.BlockSpec((tm, C_pad), lambda i: (i, 0)),
        ),
        compiler_params=pltpu.CompilerParams(
            dimension_semantics=("parallel",)),            # shard T-tiles across TCs
    )(x, gamma, wgu, wd, w1, b1, w2, b2)

    return origin_pad[:T, :H], adv_pad[:T, :C]


def combined_forward(params, *, input_ids, attention_mask):
    """Mirrors Local_Adversarial_combined_model_Llama.forward(**x).

    Returns ((adversarial_output, sequence_lengths, attention_mask),
             origin_output, embedding_output).
    """
    B, S = input_ids.shape
    H = params["emb_table"].shape[1]

    # ---- local_model glue: embedding lookup (gather stays in plain JAX) ----
    embedding_output = jnp.take(params["emb_table"], input_ids, axis=0)      # [B, S, H]
    emb_2d = embedding_output.reshape(B * S, H)

    # ---- fused local_model + adversarial_model Pallas kernel ---------------
    origin_2d, adv_2d = fused_forward_pallas(emb_2d, params)
    origin_output = origin_2d.reshape(B, S, H)
    C = adv_2d.shape[-1]
    adversarial_output = adv_2d.reshape(B, S, C)

    origin_sequence_lengths = jnp.sum(attention_mask.astype(jnp.int32), axis=-1)   # [B]
    origin_attention_mask = attention_mask

    return ((adversarial_output, origin_sequence_lengths, origin_attention_mask),
            origin_output, embedding_output)


# ----------------------------------------------------------------------------
# Pure-JAX reference (same bf16 matmul casts) for correctness checking.
# ----------------------------------------------------------------------------
def reference_forward(params, emb_2d):
    x = emb_2d.astype(jnp.float32)
    var = jnp.mean(x * x, axis=-1, keepdims=True)
    xn = (x * jax.lax.rsqrt(var + 1e-6)) * params["rms_gamma"]
    xn_bf = xn.astype(jnp.bfloat16)
    g = jnp.dot(xn_bf, params["w_gate"].astype(jnp.bfloat16),
                preferred_element_type=jnp.float32)
    u = jnp.dot(xn_bf, params["w_up"].astype(jnp.bfloat16),
                preferred_element_type=jnp.float32)
    h = (g * jax.nn.sigmoid(g)) * u
    y = jnp.dot(h.astype(jnp.bfloat16), params["w_down"].astype(jnp.bfloat16),
                preferred_element_type=jnp.float32)
    origin = x + y
    a = jnp.dot(origin.astype(jnp.bfloat16), params["w1"].astype(jnp.bfloat16),
                preferred_element_type=jnp.float32) + params["b1"]
    a = jnp.maximum(a, 0.0)
    logits = jnp.dot(a.astype(jnp.bfloat16), params["w2"].astype(jnp.bfloat16),
                     preferred_element_type=jnp.float32) + params["b2"]
    return origin, logits


# ----------------------------------------------------------------------------
# Deterministic parameter construction
# ----------------------------------------------------------------------------
def make_params(key, *, vocab=64, hidden=32, ffn=64, adv_hidden=32, num_classes=2):
    ks = jax.random.split(key, 8)
    s = lambda fan_in: 1.0 / jnp.sqrt(jnp.float32(fan_in))
    return {
        "emb_table": jax.random.normal(ks[0], (vocab, hidden), jnp.float32) * 0.02,
        "rms_gamma": jnp.ones((1, hidden), jnp.float32),
        "w_gate":    jax.random.normal(ks[1], (hidden, ffn), jnp.float32) * s(hidden),
        "w_up":      jax.random.normal(ks[2], (hidden, ffn), jnp.float32) * s(hidden),
        "w_down":    jax.random.normal(ks[3], (ffn, hidden), jnp.float32) * s(ffn),
        "w1":        jax.random.normal(ks[4], (hidden, adv_hidden), jnp.float32) * s(hidden),
        "b1":        jnp.zeros((1, adv_hidden), jnp.float32),
        "w2":        jax.random.normal(ks[5], (adv_hidden, num_classes), jnp.float32) * s(adv_hidden),
        "b2":        jnp.zeros((1, num_classes), jnp.float32),
    }


if __name__ == "__main__":
    B, S = 2, 8
    VOCAB, H, FFN, ADV_H, C = 64, 32, 64, 32, 2

    key = jax.random.PRNGKey(0)
    k_param, k_ids = jax.random.split(key)
    params = make_params(k_param, vocab=VOCAB, hidden=H, ffn=FFN,
                         adv_hidden=ADV_H, num_classes=C)

    input_ids = jax.random.randint(k_ids, (B, S), 0, VOCAB, dtype=jnp.int32)
    lengths = jnp.array([S, 5], dtype=jnp.int32)
    attention_mask = (jnp.arange(S)[None, :] < lengths[:, None]).astype(jnp.int32)

    (adv_out, seq_lens, attn_mask), origin_out, emb_out = combined_forward(
        params, input_ids=input_ids, attention_mask=attention_mask)
    jax.block_until_ready((adv_out, seq_lens, attn_mask, origin_out, emb_out))

    # Shape / finiteness checks (module contract).
    assert adv_out.shape == (B, S, C)
    assert seq_lens.shape == (B,)
    assert attn_mask.shape == (B, S)
    assert origin_out.shape == (B, S, H)
    assert emb_out.shape == (B, S, H)
    assert jnp.all(jnp.isfinite(adv_out))

    # Numerical check against a pure-JAX reference (same bf16 matmul casts).
    ref_origin, ref_adv = reference_forward(params, emb_out.reshape(B * S, H))
    assert jnp.allclose(origin_out.reshape(B * S, H), ref_origin, rtol=2e-2, atol=2e-2)
    assert jnp.allclose(adv_out.reshape(B * S, C), ref_adv, rtol=2e-2, atol=2e-2)
    assert jnp.array_equal(seq_lens, lengths)

    print("KERNEL_OK")
</pallas_src>

<mosaic_0001>
module attributes {stable_mosaic.version = 11 : i64} {
  func.func @_fused_kernel(%arg0: i32, %arg1: memref<16x128xf32, #tpu.memory_space<vmem>>, %arg2: memref<1x128xf32, #tpu.memory_space<vmem>>, %arg3: memref<128x128xbf16, #tpu.memory_space<vmem>>, %arg4: memref<64x128xbf16, #tpu.memory_space<vmem>>, %arg5: memref<128x32xbf16, #tpu.memory_space<vmem>>, %arg6: memref<1x32xf32, #tpu.memory_space<vmem>>, %arg7: memref<32x128xbf16, #tpu.memory_space<vmem>>, %arg8: memref<1x128xf32, #tpu.memory_space<vmem>>, %arg9: memref<16x128xf32, #tpu.memory_space<vmem>>, %arg10: memref<16x128xf32, #tpu.memory_space<vmem>>) attributes {dimension_semantics = [#tpu.dimension_semantics<parallel>], iteration_bounds = array<i64: 1>, scalar_prefetch = 0 : i64, scratch_operands = 0 : i64, tpu.core_type = #tpu.core_type<tc>, window_params = [{transform_indices = @transform_0, window_bounds = array<i64: 16, 128>}, {pipeline_mode = #tpu.pipeline_mode<synchronous>, transform_indices = @transform_1, window_bounds = array<i64: 1, 128>}, {pipeline_mode = #tpu.pipeline_mode<synchronous>, transform_indices = @transform_2, window_bounds = array<i64: 128, 128>}, {pipeline_mode = #tpu.pipeline_mode<synchronous>, transform_indices = @transform_3, window_bounds = array<i64: 64, 128>}, {pipeline_mode = #tpu.pipeline_mode<synchronous>, transform_indices = @transform_4, window_bounds = array<i64: 128, 32>}, {pipeline_mode = #tpu.pipeline_mode<synchronous>, transform_indices = @transform_5, window_bounds = array<i64: 1, 32>}, {pipeline_mode = #tpu.pipeline_mode<synchronous>, transform_indices = @transform_6, window_bounds = array<i64: 32, 128>}, {pipeline_mode = #tpu.pipeline_mode<synchronous>, transform_indices = @transform_7, window_bounds = array<i64: 1, 128>}, {transform_indices = @transform_8, window_bounds = array<i64: 16, 128>}, {transform_indices = @transform_9, window_bounds = array<i64: 16, 128>}]} {
    %c0 = arith.constant 0 : index
    %c0_0 = arith.constant 0 : index
    %0 = vector.load %arg1[%c0, %c0_0] : memref<16x128xf32, #tpu.memory_space<vmem>>, vector<16x128xf32>
    %1 = arith.mulf %0, %0 : vector<16x128xf32>
    %cst = arith.constant dense<0.000000e+00> : vector<16xf32>
    %2 = vector.multi_reduction <add>, %1, %cst [1] : vector<16x128xf32> to vector<16xf32>
    %3 = vector.shape_cast %2 : vector<16xf32> to vector<16x1xf32>
    %cst_1 = arith.constant 3.125000e-02 : f32
    %4 = vector.broadcast %cst_1 : f32 to vector<16x1xf32>
    %5 = arith.mulf %3, %4 : vector<16x1xf32>
    %cst_2 = arith.constant 9.99999997E-7 : f32
    %6 = vector.broadcast %cst_2 : f32 to vector<16x1xf32>
    %7 = arith.addf %5, %6 : vector<16x1xf32>
    %8 = math.rsqrt %7 : vector<16x1xf32>
    %9 = vector.broadcast %8 : vector<16x1xf32> to vector<16x128xf32>
    %10 = arith.mulf %0, %9 : vector<16x128xf32>
    %c0_3 = arith.constant 0 : index
    %c0_4 = arith.constant 0 : index
    %11 = vector.load %arg2[%c0_3, %c0_4] : memref<1x128xf32, #tpu.memory_space<vmem>>, vector<1x128xf32>
    %12 = vector.broadcast %11 : vector<1x128xf32> to vector<16x128xf32>
    %13 = arith.mulf %10, %12 : vector<16x128xf32>
    %14 = arith.truncf %13 : vector<16x128xf32> to vector<16x128xbf16>
    %c0_5 = arith.constant 0 : index
    %c0_6 = arith.constant 0 : index
    %15 = vector.load %arg3[%c0_5, %c0_6] : memref<128x128xbf16, #tpu.memory_space<vmem>>, vector<128x128xbf16>
    %cst_7 = arith.constant dense<0.000000e+00> : vector<16x128xf32>
    %16 = tpu.matmul %14, %15, %cst_7 {dimension_numbers = #tpu.dot_dimension_numbers<[1], [0], [0], [1], [0, 0, 1, 1], [], []>} : vector<16x128xbf16>, vector<128x128xbf16>, vector<16x128xf32> -> vector<16x128xf32>
    %17 = vector.extract_strided_slice %16 {offsets = [0, 0], sizes = [16, 64], strides = [1, 1]} : vector<16x128xf32> to vector<16x64xf32>
    %18 = vector.extract_strided_slice %16 {offsets = [0, 64], sizes = [16, 64], strides = [1, 1]} : vector<16x128xf32> to vector<16x64xf32>
    %19 = arith.negf %17 : vector<16x64xf32>
    %20 = math.exp %19 : vector<16x64xf32>
    %cst_8 = arith.constant 1.000000e+00 : f32
    %21 = vector.broadcast %cst_8 : f32 to vector<16x64xf32>
    %22 = arith.addf %21, %20 : vector<16x64xf32>
    %23 = arith.divf %21, %22 : vector<16x64xf32>
    %24 = arith.mulf %17, %23 : vector<16x64xf32>
    %25 = arith.mulf %24, %18 : vector<16x64xf32>
    %26 = arith.truncf %25 : vector<16x64xf32> to vector<16x64xbf16>
    %c0_9 = arith.constant 0 : index
    %c0_10 = arith.constant 0 : index
    %27 = vector.load %arg4[%c0_9, %c0_10] : memref<64x128xbf16, #tpu.memory_space<vmem>>, vector<64x128xbf16>
    %cst_11 = arith.constant dense<0.000000e+00> : vector<16x128xf32>
    %28 = tpu.matmul %26, %27, %cst_11 {dimension_numbers = #tpu.dot_dimension_numbers<[1], [0], [0], [1], [0, 0, 1, 1], [], []>} : vector<16x64xbf16>, vector<64x128xbf16>, vector<16x128xf32> -> vector<16x128xf32>
    %29 = arith.addf %0, %28 : vector<16x128xf32>
    %c0_12 = arith.constant 0 : index
    %c0_13 = arith.constant 0 : index
    %30 = vector.load %arg9[%c0_12, %c0_13] : memref<16x128xf32, #tpu.memory_space<vmem>>, vector<16x128xf32>
    tpu.vector_store %arg9[%c0_12, %c0_13], %29 {strides = array<i32>} : memref<16x128xf32, #tpu.memory_space<vmem>>, vector<16x128xf32>,
    %31 = arith.truncf %29 : vector<16x128xf32> to vector<16x128xbf16>
    %c0_14 = arith.constant 0 : index
    %c0_15 = arith.constant 0 : index
    %32 = vector.load %arg5[%c0_14, %c0_15] : memref<128x32xbf16, #tpu.memory_space<vmem>>, vector<128x32xbf16>
    %cst_16 = arith.constant dense<0.000000e+00> : vector<16x32xf32>
    %33 = tpu.matmul %31, %32, %cst_16 {dimension_numbers = #tpu.dot_dimension_numbers<[1], [0], [0], [1], [0, 0, 1, 1], [], []>} : vector<16x128xbf16>, vector<128x32xbf16>, vector<16x32xf32> -> vector<16x32xf32>
    %c0_17 = arith.constant 0 : index
    %c0_18 = arith.constant 0 : index
    %34 = vector.load %arg6[%c0_17, %c0_18] : memref<1x32xf32, #tpu.memory_space<vmem>>, vector<1x32xf32>
    %35 = vector.broadcast %34 : vector<1x32xf32> to vector<16x32xf32>
    %36 = arith.addf %33, %35 : vector<16x32xf32>
    %cst_19 = arith.constant 0.000000e+00 : f32
    %37 = vector.broadcast %cst_19 : f32 to vector<16x32xf32>
    %38 = arith.maximumf %36, %37 : vector<16x32xf32>
    %39 = arith.truncf %38 : vector<16x32xf32> to vector<16x32xbf16>
    %c0_20 = arith.constant 0 : index
    %c0_21 = arith.constant 0 : index
    %40 = vector.load %arg7[%c0_20, %c0_21] : memref<32x128xbf16, #tpu.memory_space<vmem>>, vector<32x128xbf16>
    %cst_22 = arith.constant dense<0.000000e+00> : vector<16x128xf32>
    %41 = tpu.matmul %39, %40, %cst_22 {dimension_numbers = #tpu.dot_dimension_numbers<[1], [0], [0], [1], [0, 0, 1, 1], [], []>} : vector<16x32xbf16>, vector<32x128xbf16>, vector<16x128xf32> -> vector<16x128xf32>
    %c0_23 = arith.constant 0 : index
    %c0_24 = arith.constant 0 : index
    %42 = vector.load %arg8[%c0_23, %c0_24] : memref<1x128xf32, #tpu.memory_space<vmem>>, vector<1x128xf32>
    %43 = vector.broadcast %42 : vector<1x128xf32> to vector<16x128xf32>
    %44 = arith.addf %41, %43 : vector<16x128xf32>
    %c0_25 = arith.constant 0 : index
    %c0_26 = arith.constant 0 : index
    %45 = vector.load %arg10[%c0_25, %c0_26] : memref<16x128xf32, #tpu.memory_space<vmem>>, vector<16x128xf32>
    tpu.vector_store %arg10[%c0_25, %c0_26], %44 {strides = array<i32>} : memref<16x128xf32, #tpu.memory_space<vmem>>, vector<16x128xf32>,
    return
  }
  func.func @transform_0(%arg0: i32) -> (i32, i32) {
    %c0_i32 = arith.constant 0 : i32
    %c0_i32_0 = arith.constant 0 : i32
    return %arg0, %c0_i32 : i32, i32
  }
  func.func @transform_1(%arg0: i32) -> (i32, i32) {
    %c0_i32 = arith.constant 0 : i32
    %c0_i32_0 = arith.constant 0 : i32
    %c0_i32_1 = arith.constant 0 : i32
    return %c0_i32, %c0_i32_0 : i32, i32
  }
  func.func @transform_2(%arg0: i32) -> (i32, i32) {
    %c0_i32 = arith.constant 0 : i32
    %c0_i32_0 = arith.constant 0 : i32
    %c0_i32_1 = arith.constant 0 : i32
    return %c0_i32, %c0_i32_0 : i32, i32
  }
  func.func @transform_3(%arg0: i32) -> (i32, i32) {
    %c0_i32 = arith.constant 0 : i32
    %c0_i32_0 = arith.constant 0 : i32
    %c0_i32_1 = arith.constant 0 : i32
    return %c0_i32, %c0_i32_0 : i32, i32
  }
  func.func @transform_4(%arg0: i32) -> (i32, i32) {
    %c0_i32 = arith.constant 0 : i32
    %c0_i32_0 = arith.constant 0 : i32
    %c0_i32_1 = arith.constant 0 : i32
    return %c0_i32, %c0_i32_0 : i32, i32
  }
  func.func @transform_5(%arg0: i32) -> (i32, i32) {
    %c0_i32 = arith.constant 0 : i32
    %c0_i32_0 = arith.constant 0 : i32
    %c0_i32_1 = arith.constant 0 : i32
    return %c0_i32, %c0_i32_0 : i32, i32
  }
  func.func @transform_6(%arg0: i32) -> (i32, i32) {
    %c0_i32 = arith.constant 0 : i32
    %c0_i32_0 = arith.constant 0 : i32
    %c0_i32_1 = arith.constant 0 : i32
    return %c0_i32, %c0_i32_0 : i32, i32
  }
  func.func @transform_7(%arg0: i32) -> (i32, i32) {
    %c0_i32 = arith.constant 0 : i32
    %c0_i32_0 = arith.constant 0 : i32
    %c0_i32_1 = arith.constant 0 : i32
    return %c0_i32, %c0_i32_0 : i32, i32
  }
  func.func @transform_8(%arg0: i32) -> (i32, i32) {
    %c0_i32 = arith.constant 0 : i32
    %c0_i32_0 = arith.constant 0 : i32
    return %arg0, %c0_i32 : i32, i32
  }
  func.func @transform_9(%arg0: i32) -> (i32, i32) {
    %c0_i32 = arith.constant 0 : i32
    %c0_i32_0 = arith.constant 0 : i32
    return %arg0, %c0_i32 : i32, i32
  }
}

</mosaic_0001>

<bundles_post_ra>
// kernel: tpu_custom_call.1
= control target key start
LH: loop header
LB: loop body
LE: loop exit
PB: predicated region body
PF: predicated region fallthrough
CT: control target
= control target key end

     0   :  { %15 = vsyncpa [#allocation3], 0  ;;  %s950_s0 = inlined_call_operand.vmem [shape: f32[16,128], index: 0, kind: input, shape index: {}]   ;;  %s951_s1 = inlined_call_operand.vmem [shape: f32[1,128], index: 1, kind: input, shape index: {}]   ;;  %s952_s2 = inlined_call_operand.vmem [shape: bf16[128,128], index: 2, kind: input, shape index: {}]   ;;  %s953_s3 = inlined_call_operand.hbm [shape: bf16[64,128], index: 3, kind: input, shape index: {}]   ;;  %s954_s4 = inlined_call_operand.vmem [shape: bf16[128,32], index: 4, kind: input, shape index: {}]   ;;  %s955_s5 = inlined_call_operand.vmem [shape: f32[1,32], index: 5, kind: input, shape index: {}]   ;;  %s956_s6 = inlined_call_operand.vmem [shape: bf16[32,128], index: 6, kind: input, shape index: {}]   ;;  %s957_s7 = inlined_call_operand.vmem [shape: f32[1,128], index: 7, kind: input, shape index: {}]   ;;  %s958_s8 = inlined_call_operand.hbm [shape: f32[16,128], index: 8, kind: output, shape index: {0}]   ;;  %s959_s9 = inlined_call_operand.hbm [shape: f32[16,128], index: 9, kind: output, shape index: {1}]  }
   0x1   :  { %16 = vsyncpa [#allocation4], 0 }
   0x2   :  { %17 = vsyncpa [#allocation7], 0  ;;  %s734_s30 = smov [#allocation2]   ;;  %s662_s13 = scalar_lea.hbm %s953_s3, 512 }
   0x3   :  { %s29_s10 = sshll.u32 %s734_s30, 4  ;;  %p663_p0 = scmp.ne.s32.totalorder %s953_s3, %s662_s13  ;;  %s30_s10 = int_to_ptr.vmem [resolvable:$true] %s29_s10 }
   0x4   :  { %p666_p1 = scmp.lt.u32.totalorder %s662_s13, %s953_s3 }
   0x6   :  { %p668_p2 = pnand %p666_p1, %p663_p0 }
   0x8   :  { %671 = shalt.err (!%p668_p2)
}
   0x9   :  { %s672_s18 = scalar_lea.vmem %s30_s10, 512  ;;  %p677_p4 = scmp.lt.s32.totalorder %s30_s10, %s30_s10 }
   0xa   :  { %p673_p3 = scmp.ne.s32.totalorder %s30_s10, %s672_s18  ;;  %p678_p5 = scmp.lt.s32.totalorder %s672_s18, %s672_s18 }
   0xc   :  { %p679_p6 = por %p678_p5, %p677_p4 }
   0xe   :  { %p680_p7 = pnand %p679_p6, %p673_p3 }
  0x10   :  { %683 = shalt.err (!%p680_p7)
}
  0x11   :  { %s735_s19 = smov 64   ;;  %s736_s20 = smov 4  }
  0x12   :  { %35 = dma.hbm_to_vmem [thread:$0]  %s953_s3, 512, %s30_s10, [#allocation3], %s735_s19, %s735_s19, %s736_s20  }
  0x13   :  { %728 = dma.done.wait [#allocation3], 512  }
  0x14   :  { %729 = vsyncadd [#allocation3], 4294966784  ;;  %v737_v0 = vmov 0.0   ;;  %v812_v1 = vld [vmem:[%s950_s0] sm:$0xff]  ;;  %v817_v2 = vld [vmem:[%s950_s0 + $0x8] sm:$0xff]  ;;  %vm738_vm0 = vmmov 0  }
  0x15   :  { %559 = vmatprep.subr.bf16.mxu0 %v737_v0  ;;  %579 = vmatprep.subr.bf16.mxu1 %v737_v0  ;;  %v50_v3 = vmul.f32 %v812_v1, %v812_v1  ;;  %v628_v4 = vld [vmem:[%s952_s2] sm:$0xff]   ;;  %v629_v5 = vld [vmem:[%s952_s2 + $0x8] sm:$0xff]   ;;  %v51_v6 = vmul.f32 %v817_v2, %v817_v2  ;;  %v630_v7 = vld [vmem:[%s952_s2 + $0x10] sm:$0xff]   ;;  %vm236_vm1 = vcmask 523264   ;;  %vm424_vm2 = vcmask 261120   ;;  %s739_s18 = smov [#allocation5]  }
  0x16   :  { %560 = vmatpush3.bf16.msra.mxu0 %v628_v4  ;;  %v631_v8 = vld [vmem:[%s952_s2 + $0x18] sm:$0xff]   ;;  %v632_v9 = vld [vmem:[%s952_s2 + $0x20] sm:$0xff]   ;;  %575 = vmatprep.mubr.msk.bf16.mxu0 %vm738_vm0, %v737_v0  ;;  %v633_v10 = vld [vmem:[%s952_s2 + $0x28] sm:$0xff]   ;;  %s476_s20 = sshll.u32 %s739_s18, 4  ;;  %s477_s20 = int_to_ptr.vmem [resolvable:$true] %s476_s20 }
  0x17   :  { %52 = vadd.xlane.f32.xlu0 %v50_v3  ;;  %561 = vmatprep.subr.bf16.mxu0 %v737_v0  ;;  %v634_v11 = vld [vmem:[%s952_s2 + $0x30] sm:$0xff]   ;;  %v635_v12 = vld [vmem:[%s952_s2 + $0x38] sm:$0xff]   ;;  %v504_v22 = vld [vmem:[%s951_s1] ss:$0 sm:$0xff]  ;;  %p689_p9 = scmp.lt.s32.totalorder %s477_s20, %s477_s20 }
  0x18   :  { %587 = vmatprep.mubr.msk.bf16.mxu1 %vm738_vm0, %v737_v0  ;;  %v636_v27 = vld [vmem:[#allocation2] sm:$0xff]   ;;  %v637_v28 = vld [vmem:[#allocation2 + $0x8] sm:$0xff]   ;;  %v638_v29 = vld [vmem:[#allocation2 + $0x10] sm:$0xff]  }
  0x19   :  { %580 = vmatpush3.bf16.msra.mxu1 %v636_v27  ;;  %v639_v30 = vld [vmem:[#allocation2 + $0x18] sm:$0xff]   ;;  %v640_v49 = vld [vmem:[%s954_s4] sm:$0xff]   ;;  %v641_v51 = vld [vmem:[%s954_s4 + $0x8] sm:$0xff]  }
  0x1a   :  { %562 = vmatpush3.bf16.msra.mxu0 %v629_v5  ;;  %581 = vmatprep.subr.bf16.mxu1 %v737_v0  ;;  %v642_v52 = vld [vmem:[%s954_s4 + $0x10] sm:$0xff]   ;;  %v643_v53 = vld [vmem:[%s954_s4 + $0x18] sm:$0xff]   ;;  %v644_v54 = vld [vmem:[%s954_s4 + $0x20] sm:$0xff]  }
  0x1b   :  { %54 = vadd.xlane.f32.xlu0 %v51_v6  ;;  %563 = vmatprep.subr.bf16.mxu0 %v737_v0  ;;  %v645_v55 = vld [vmem:[%s954_s4 + $0x28] sm:$0xff]   ;;  %v646_v56 = vld [vmem:[%s954_s4 + $0x30] sm:$0xff]   ;;  %v647_v57 = vld [vmem:[%s954_s4 + $0x38] sm:$0xff]  }
  0x1c   :  { %v648_v4 = vld [vmem:[%s956_s6] sm:$0xff]  }
  0x1d   :  { %582 = vmatpush3.bf16.msra.mxu1 %v637_v28 }
  0x1e   :  { %564 = vmatpush3.bf16.msra.mxu0 %v630_v7  ;;  %583 = vmatprep.subr.bf16.mxu1 %v737_v0 }
  0x1f   :  { %565 = vmatprep.subr.bf16.mxu0 %v737_v0 }
  0x21   :  { %584 = vmatpush3.bf16.msra.mxu1 %v638_v29 }
  0x22   :  { %566 = vmatpush3.bf16.msra.mxu0 %v631_v8  ;;  %585 = vmatprep.subr.bf16.mxu1 %v737_v0 }
  0x23   :  { %567 = vmatprep.subr.bf16.mxu0 %v737_v0 }
  0x25   :  { %586 = vmatpush3.bf16.msra.mxu1 %v639_v30 }
  0x26   :  { %568 = vmatpush3.bf16.msra.mxu0 %v632_v9  ;;  %591 = vmatprep.subr.bf16.mxu1 %v737_v0 }
  0x27   :  { %569 = vmatprep.subr.bf16.mxu0 %v737_v0 }
  0x2a   :  { %570 = vmatpush3.bf16.msra.mxu0 %v633_v10 }
  0x2b   :  { %571 = vmatprep.subr.bf16.mxu0 %v737_v0 }
  0x2e   :  { %572 = vmatpush3.bf16.msra.mxu0 %v634_v11 }
  0x2f   :  { %573 = vmatprep.subr.bf16.mxu0 %v737_v0 }
  0x32   :  { %574 = vmatpush3.bf16.msra.mxu0 %v635_v12 }
  0x33   :  { %611 = vmatprep.subr.bf16.mxu0 %v737_v0 }
  0xa4   :  { %v53_v13 = vpop.xlane.xlu0 %52 }
  0xa5   :  { %v56_v14 = vmul.f32 0.03125, %v53_v13 }
  0xa7   :  { %v58_v15 = vadd.f32 1e-06, %v56_v14 }
  0xa8   :  { %v55_v16 = vpop.xlane.xlu0 %54 }
  0xa9   :  { %650 = vrsqrt.f32 %v58_v15  ;;  %v57_v17 = vmul.f32 0.03125, %v55_v16 }
  0xab   :  { %v59_v18 = vadd.f32 1e-06, %v57_v17 }
  0xad   :  { %652 = vrsqrt.f32 %v59_v18 }
  0xb3   :  { %v651_v19 = vpop.eup %650 }
  0xb4   :  { %v62_v20 = vmul.f32 %v651_v19, %v812_v1 }
  0xb6   :  { %v71_v24 = vmul.f32 %v504_v22, %v62_v20 }
  0xb7   :  { %v653_v21 = vpop.eup %652 }
  0xb8   :  { %v63_v23 = vmul.f32 %v653_v21, %v817_v2 }
  0xba   :  { %v72_v25 = vmul.f32 %v504_v22, %v63_v23 }
  0xbc   :  { %v73_v26 = vpack.c.bf16 %v72_v25, %v71_v24 }
  0xbe   :  { %576 = vmatmul.mubr.bf16.vlgmr.msra.gmra.mrb[0].mxu0 %v73_v26 }
  0xbf   :  { %615 = vmatprep.mubr.msk.bf16.mxu0 %vm738_vm0, %v737_v0  ;;  %612 = vmatpush3.bf16.msra.mxu0 %v648_v4 }
  0xc0   :  { %613 = vmatprep.subr.bf16.mxu0 %v737_v0 }
 0x191   :  { %v172_v31 = vpop.f32.mrb[0].mxu0 }
 0x192   :  { %195 = vrot.lane.b32.xlu1 %v172_v31, %s735_s19  ;;  %v577_v32 = vpop.f32.mrb[1].mxu0  ;;  %v513_v35 = vmul.f32 -1.442695, %v172_v31 }
 0x193   :  { %v175_v33 = vpop.f32.mrb[2].mxu0 }
 0x194   :  { %v578_v34 = vpop.f32.mrb[3].mxu0  ;;  %v514_v36 = vmul.f32 -1.442695, %v175_v33  ;;  %654 = vpow2.f32 %v513_v35 }
 0x196   :  { %197 = vrot.lane.b32.xlu1 %v175_v33, %s735_s19  ;;  %656 = vpow2.f32 %v514_v36 }
 0x19e   :  { %v655_v37 = vpop.eup %654 }
 0x19f   :  { %v185_v39 = vadd.f32 1.0, %v655_v37 }
 0x1a0   :  { %v657_v38 = vpop.eup %656 }
 0x1a1   :  { %v186_v40 = vadd.f32 1.0, %v657_v38  ;;  %658 = vrcp.f32 %v185_v39 }
 0x1a3   :  { %660 = vrcp.f32 %v186_v40 }
 0x1ab   :  { %v659_v41 = vpop.eup %658 }
 0x1ac   :  { %v191_v44 = vmul.f32 %v659_v41, %v172_v31 }
 0x1ad   :  { %v661_v42 = vpop.eup %660 }
 0x1ae   :  { %v192_v45 = vmul.f32 %v661_v42, %v175_v33 }
 0x204   :  { %v196_v43 = vpop.permute.xlu1 %195 }
 0x205   :  { %v201_v47 = vmul.f32 %v196_v43, %v191_v44 }
 0x208   :  { %v198_v46 = vpop.permute.xlu1 %197 }
 0x209   :  { %v202_v48 = vmul.f32 %v198_v46, %v192_v45 }
 0x20b   :  { %v203_v50 = vpack.c.bf16 %v202_v48, %v201_v47 }
 0x20d   :  { %588 = vmatmul.mubr.msk.bf16.vlgmr.msra.gmra.mrb[0].mxu1 %vm236_vm1, %v203_v50 }
 0x20e   :  { %592 = vmatpush3.bf16.msra.mxu1 %v640_v49  ;;  %607 = vmatprep.mubr.msk.bf16.mxu1 %vm738_vm0, %v737_v0 }
 0x20f   :  { %593 = vmatprep.subr.bf16.mxu1 %v737_v0 }
 0x212   :  { %594 = vmatpush3.bf16.msra.mxu1 %v641_v51 }
 0x213   :  { %595 = vmatprep.subr.bf16.mxu1 %v737_v0 }
 0x216   :  { %596 = vmatpush3.bf16.msra.mxu1 %v642_v52 }
 0x217   :  { %597 = vmatprep.subr.bf16.mxu1 %v737_v0 }
 0x21a   :  { %598 = vmatpush3.bf16.msra.mxu1 %v643_v53 }
 0x21b   :  { %599 = vmatprep.subr.bf16.mxu1 %v737_v0 }
 0x21e   :  { %600 = vmatpush3.bf16.msra.mxu1 %v644_v54 }
 0x21f   :  { %601 = vmatprep.subr.bf16.mxu1 %v737_v0 }
 0x222   :  { %602 = vmatpush3.bf16.msra.mxu1 %v645_v55 }
 0x223   :  { %603 = vmatprep.subr.bf16.mxu1 %v737_v0 }
 0x226   :  { %604 = vmatpush3.bf16.msra.mxu1 %v646_v56 }
 0x227   :  { %605 = vmatprep.subr.bf16.mxu1 %v737_v0 }
 0x22a   :  { %606 = vmatpush3.bf16.msra.mxu1 %v647_v57 }
 0x2e0   :  { %v274_v58 = vpop.f32.mrb[0].mxu1 }
 0x2e1   :  { %v281_v59 = vadd.f32 %v274_v58, %v812_v1  ;;  %v589_v60 = vpop.f32.mrb[1].mxu1  ;;  %v649_v1 = vld [vmem:[%s956_s6 + $0x8] sm:$0xff]   ;;  %s684_s6 = scalar_lea.vmem %s477_s20, 256 }
 0x2e2   :  { %v277_v61 = vpop.f32.mrb[2].mxu1  ;;  %614 = vmatpush3.bf16.msra.mxu0 %v649_v1  ;;  %p685_p8 = scmp.ne.s32.totalorder %s477_s20, %s684_s6  ;;  %p690_p10 = scmp.lt.s32.totalorder %s684_s6, %s684_s6 }
 0x2e3   :  { %283 = vst [vmem:[#allocation5] sm:$0xff] %v281_v59  ;;  %v282_v62 = vadd.f32 %v277_v61, %v817_v2  ;;  %v590_v63 = vpop.f32.mrb[3].mxu1  ;;  %v520_v2 = vld [vmem:[%s955_s5] ss:$0 sm:$0xff] }
 0x2e4   :  { %p691_p11 = por %p690_p10, %p689_p9 }
 0x2e5   :  { %284 = vst [vmem:[#allocation5 + $0x8] sm:$0xff] %v282_v62  ;;  %v285_v3 = vpack.c.bf16 %v282_v62, %v281_v59 }
 0x2e6   :  { %p692_p12 = pnand %p691_p11, %p685_p8 }
 0x2e7   :  { %608 = vmatmul.mubr.bf16.vlgmr.msra.gmra.mrb[4].mxu1 %v285_v3 }
 0x3ba   :  { %v391_v5 = vpop.f32.mrb[4].mxu1 }
 0x3bb   :  { %v392_v6 = vadd.f32 %v520_v2, %v391_v5  ;;  %v609_v7 = vpop.f32.mrb[5].mxu1 }
 0x3bc   :  { %v394_v8 = vpop.f32.mrb[6].mxu1 }
 0x3bd   :  { %v395_v9 = vadd.f32 %v520_v2, %v394_v8  ;;  %v610_v10 = vpop.f32.mrb[7].mxu1  ;;  %v398_v11 = vmax.f32 %v392_v6, 0.0 }
 0x3bf   :  { %v399_v12 = vmax.f32 %v395_v9, 0.0 }
 0x3c1   :  { %v400_v13 = vpack.c.bf16 %v399_v12, %v398_v11 }
 0x3c3   :  { %616 = vmatmul.mubr.msk.bf16.vlgmr.msra.gmra.mrb[4].mxu0 %vm424_vm2, %v400_v13 }
 0x3c4   :  { %695 = shalt.err (!%p692_p12)
}
 0x3c5   :  { %s696_s22 = scalar_lea.hbm %s958_s8, 256 }
 0x3c6   :  { %p697_p13 = scmp.ne.s32.totalorder %s958_s8, %s696_s22  ;;  %p700_p0 = scmp.lt.u32.totalorder %s696_s22, %s958_s8 }
 0x3c8   :  { %p702_p1 = pnand %p700_p0, %p697_p13 }
 0x3ca   :  { %705 = shalt.err (!%p702_p1)
}
 0x3cb   :  { %s740_s24 = smov 128   ;;  %s741_s25 = smov 8   ;;  %v529_v0 = vld [vmem:[%s957_s7] ss:$0 sm:$0xff] }
 0x3cc   :  { %482 = dma.vmem_to_hbm [thread:$0]  %s477_s20, 256, %s958_s8, [#allocation4], %s740_s24, %s740_s24, %s741_s25  }
 0x3cd   :  { %s742_s29 = smov [#allocation6]  }
 0x3ce   :  { %s488_s0 = sshll.u32 %s742_s29, 4  ;;  %s489_s0 = int_to_ptr.vmem [resolvable:$true] %s488_s0 }
 0x3cf   :  { %s706_s30 = scalar_lea.vmem %s489_s0, 256  ;;  %p711_p3 = scmp.lt.s32.totalorder %s489_s0, %s489_s0 }
 0x3d0   :  { %p707_p2 = scmp.ne.s32.totalorder %s489_s0, %s706_s30  ;;  %p712_p4 = scmp.lt.s32.totalorder %s706_s30, %s706_s30 }
 0x3d2   :  { %p713_p5 = por %p712_p4, %p711_p3 }
 0x3d4   :  { %p714_p6 = pnand %p713_p5, %p707_p2 }
 0x496   :  { %v462_v14 = vpop.f32.mrb[4].mxu0 }
 0x497   :  { %v463_v15 = vadd.f32 %v529_v0, %v462_v14  ;;  %v617_v16 = vpop.f32.mrb[5].mxu0 }
 0x498   :  { %v465_v17 = vpop.f32.mrb[6].mxu0 }
 0x499   :  { %469 = vst [vmem:[#allocation6] sm:$0xff] %v463_v15  ;;  %v466_v18 = vadd.f32 %v529_v0, %v465_v17  ;;  %v618_v19 = vpop.f32.mrb[7].mxu0 }
 0x49b   :  { %470 = vst [vmem:[#allocation6 + $0x8] sm:$0xff] %v466_v18 }
 0x49c   :  { %717 = shalt.err (!%p714_p6)
}
 0x49d   :  { %s718_s10 = scalar_lea.hbm %s959_s9, 256 }
 0x49e   :  { %p719_p7 = scmp.ne.s32.totalorder %s959_s9, %s718_s10  ;;  %p722_p8 = scmp.lt.u32.totalorder %s718_s10, %s959_s9 }
 0x4a0   :  { %p724_p9 = pnand %p722_p8, %p719_p7 }
 0x4a2   :  { %727 = shalt.err (!%p724_p9)
}
 0x4a3   :  { %494 = dma.vmem_to_hbm [thread:$0]  %s489_s0, 256, %s959_s9, [#allocation7], %s740_s24, %s740_s24, %s741_s25  }
 0x4a4   :  { %730 = dma.done.wait [#allocation4], 256  }
 0x4a5   :  { %731 = vsyncadd [#allocation4], 4294967040 }
 0x4a6   :  { %732 = dma.done.wait [#allocation7], 256  }
 0x4a7   :  { %733 = vsyncadd [#allocation7], 4294967040 }
 0x4a8   :  { %501 = vsyncpa [#allocation3], 1 }
 0x4a9   :  { %502 = vsyncpa [#allocation4], 1 }
 0x4aa   :  { %503 = vsyncpa [#allocation7], 1 }

</bundles_post_ra>
